<compile_context>
chip_gen: v5e
topology: v5e:2x2
jax: 0.10.0
libtpu: 0.0.40
codegen_flags: <defaults>
</compile_context>

<pallas_src>
import jax
import jax.numpy as jnp
from jax.experimental import pallas as pl
from jax.experimental.pallas import tpu as pltpu


IN_FEATURES = 48
HIDDEN = (256, 128, 64)
NUM_ACTIONS = 4
DIMS = (IN_FEATURES,) + HIDDEN + (NUM_ACTIONS,)

TILE_MAX = 4096                      # rows per grid step (peak VMEM ~10-15 MB)
VMEM_LIMIT_BYTES = 40 * 1024 * 1024  # explicit scoped-VMEM limit for all gens


def _cdiv(a, b):
    return -(-a // b)


def _round_up(n, m):
    return _cdiv(n, m) * m


def _choose_tile(rows):
    """Rows per grid step (rows >= 128, tile is a multiple of 128, tile <= rows).

    At least 2 steps whenever possible (v7x has 2 TensorCores), near-balanced
    steps so the ragged last tile wastes few rows, capped at TILE_MAX.
    """
    steps = max(2, _cdiv(rows, TILE_MAX))
    return _round_up(_cdiv(rows, steps), 128)


def _policy_mlp_kernel(x_ref,
                       w1_ref, b1_ref,
                       w2_ref, b2_ref,
                       w3t_ref, b3_ref,
                       w4t_ref, b4_ref,
                       out_ref):
    """One batch tile: 4 MXU matmuls (bf16 in, f32 acc), f32 ReLU, softmax.

    Layers 1-2 run in (batch, features) layout (256/128-wide outputs are
    already lane-dense).  One bf16 transpose of the (TILE, 128) hidden (XLU,
    otherwise idle) switches to (features, batch) for layers 3-4 and the
    softmax, so the 4-wide action axis sits on sublanes and the batch fills
    the 128 lanes -> dense EUP/XLU/VPU epilogue and lane-dense output stores.
    """
    # In-kernel f32 -> bf16 cast (no extra wrapper pass over x in HBM).
    x = x_ref[...].astype(jnp.bfloat16)                              # (TILE, 48)

    # Layer 1: 48 -> 256                                              (TILE, 256)
    h = jnp.dot(x, w1_ref[...], preferred_element_type=jnp.float32) + b1_ref[...]
    h = jnp.maximum(h, 0.0).astype(jnp.bfloat16)

    # Layer 2: 256 -> 128                                             (TILE, 128)
    h = jnp.dot(h, w2_ref[...], preferred_element_type=jnp.float32) + b2_ref[...]
    h = jnp.maximum(h, 0.0).astype(jnp.bfloat16)

    # Switch to (features, batch): single bf16 transpose of the tile.
    ht = h.T                                                         # (128, TILE)

    # Layer 3: 128 -> 64                                              (64, TILE)
    h3 = jnp.dot(w3t_ref[...], ht, preferred_element_type=jnp.float32) + b3_ref[...]
    h3 = jnp.maximum(h3, 0.0).astype(jnp.bfloat16)

    # Layer 4: 64 -> 4 (logits, f32)                                  (4, TILE)
    logits = (jnp.dot(w4t_ref[...], h3, preferred_element_type=jnp.float32)
              + b4_ref[...])

    # Numerically-stable softmax over the action axis (axis 0, 4 sublanes).
    # Every op here operates on lane-dense (.., TILE) vregs; divide -> EUP.
    m = jnp.max(logits, axis=0, keepdims=True)                       # (1, TILE)
    e = jnp.exp(logits - m)                                          # (4, TILE)
    inv = pl.reciprocal(jnp.sum(e, axis=0, keepdims=True), approx=True)
    out_ref[...] = (e * inv).astype(out_ref.dtype)                   # (4, TILE)


def prepare_params(params):
    """One-time packing: bf16 weights (w3/w4 pre-transposed), f32 biases."""
    (w1, b1), (w2, b2), (w3, b3), (w4, b4) = params
    return (
        jnp.asarray(w1, jnp.bfloat16),                   # (48, 256)
        jnp.asarray(b1, jnp.float32).reshape(1, -1),     # (1, 256)
        jnp.asarray(w2, jnp.bfloat16),                   # (256, 128)
        jnp.asarray(b2, jnp.float32).reshape(1, -1),     # (1, 128)
        jnp.asarray(w3, jnp.bfloat16).T,                 # (64, 128)
        jnp.asarray(b3, jnp.float32).reshape(-1, 1),     # (64, 1)
        jnp.asarray(w4, jnp.bfloat16).T,                 # (4, 64)
        jnp.asarray(b4, jnp.float32).reshape(-1, 1),     # (4, 1)
    )


@jax.jit
def policy_forward(x, prepped):
    """x: (B, 48) float32 -> (B, 4) float32 action probabilities."""
    batch = x.shape[0]

    # Tiny batches: pad up to one 128-row tile (negligible, keeps all block
    # shapes on native (8/16, 128) multiples).  Larger batches: never padded;
    # cdiv grid + masked partial last block handles raggedness.
    rows = max(batch, 128)
    if rows > batch:
        x = jnp.pad(x, ((0, rows - batch), (0, 0)))

    tile = _choose_tile(rows)
    grid = _cdiv(rows, tile)

    def resident(arr):
        # Full-array block, same block index every step -> VMEM-resident, no
        # re-DMA across grid steps.
        # TODO(synk): pipeline_mode=pl.Buffered(1) would also drop the unused
        # second buffer for these constants (minor VMEM hygiene).
        return pl.BlockSpec(arr.shape, lambda i: (0, 0))

    per_row_flops = 2 * sum(DIMS[i] * DIMS[i + 1] for i in range(len(DIMS) - 1))
    param_bytes = sum(int(a.size) * a.dtype.itemsize for a in prepped)
    cost = pl.CostEstimate(
        flops=batch * per_row_flops,
        transcendentals=batch * (NUM_ACTIONS + 1),        # exp + reciprocal
        bytes_accessed=(batch * IN_FEATURES * 4           # f32 x in
                        + batch * NUM_ACTIONS * 4         # f32 probs out
                        + param_bytes),                   # resident params
    )

    out_t = pl.pallas_call(
        _policy_mlp_kernel,
        out_shape=jax.ShapeDtypeStruct((NUM_ACTIONS, rows), jnp.float32),
        grid=(grid,),
        in_specs=[pl.BlockSpec((tile, IN_FEATURES), lambda i: (i, 0))]
                 + [resident(a) for a in prepped],
        out_specs=pl.BlockSpec((NUM_ACTIONS, tile), lambda i: (0, i)),
        compiler_params=pltpu.CompilerParams(
            dimension_semantics=("parallel",),
            vmem_limit_bytes=VMEM_LIMIT_BYTES),
        cost_estimate=cost,
    )(x, *prepped)

    # (4, rows) -> (batch, 4): cheap layout plumbing so the kernel's stores
    # stay lane-dense while callers see the PyTorch layout.
    return out_t[:, :batch].T


def init_params(key):
    """nn.Linear-style U(-1/sqrt(fan_in), +1/sqrt(fan_in)) init (f32 master)."""
    params = []
    for i in range(len(DIMS) - 1):
        fan_in, fan_out = DIMS[i], DIMS[i + 1]
        key, kw, kb = jax.random.split(key, 3)
        bound = 1.0 / float(fan_in) ** 0.5
        w = jax.random.uniform(kw, (fan_in, fan_out), jnp.float32, -bound, bound)
        b = jax.random.uniform(kb, (fan_out,), jnp.float32, -bound, bound)
        params.append((w, b))
    return params


def _reference_forward(x, params):
    """Pure-JAX reference mirroring the kernel's dtype path (bf16 matmul, f32 acc)."""
    h = x.astype(jnp.bfloat16)
    n = len(params)
    for i, (w, b) in enumerate(params):
        h = jnp.dot(h, w.astype(jnp.bfloat16),
                    preferred_element_type=jnp.float32) + b.astype(jnp.float32)
        if i < n - 1:
            h = jnp.maximum(h, 0.0).astype(jnp.bfloat16)
    return jax.nn.softmax(h, axis=-1)


def _check(batch, key, params, prepped):
    kx = jax.random.fold_in(key, batch)
    x = jax.random.normal(kx, (batch, IN_FEATURES), jnp.float32)
    probs = jax.block_until_ready(policy_forward(x, prepped))
    ref = _reference_forward(x, params)
    assert probs.shape == (batch, NUM_ACTIONS)
    assert bool(jnp.all(jnp.isfinite(probs)))
    assert bool(jnp.allclose(jnp.sum(probs, axis=-1), 1.0, atol=5e-3))
    assert bool(jnp.allclose(probs, ref, atol=1e-2, rtol=1e-2))


if __name__ == "__main__":
    key = jax.random.PRNGKey(0)
    params = init_params(key)
    prepped = prepare_params(params)

    _check(16, key, params, prepped)    # tiny batch: single (padded) 128-row tile
    _check(600, key, params, prepped)   # 2 grid steps + ragged masked last tile

    print("KERNEL_OK")
</pallas_src>

<mosaic_0001>
module attributes {stable_mosaic.version = 11 : i64} {
  func.func @_policy_mlp_kernel(%arg0: i32, %arg1: memref<128x48xf32, #tpu.memory_space<vmem>>, %arg2: memref<48x256xbf16, #tpu.memory_space<vmem>>, %arg3: memref<1x256xf32, #tpu.memory_space<vmem>>, %arg4: memref<256x128xbf16, #tpu.memory_space<vmem>>, %arg5: memref<1x128xf32, #tpu.memory_space<vmem>>, %arg6: memref<64x128xbf16, #tpu.memory_space<vmem>>, %arg7: memref<64x1xf32, #tpu.memory_space<vmem>>, %arg8: memref<4x64xbf16, #tpu.memory_space<vmem>>, %arg9: memref<4x1xf32, #tpu.memory_space<vmem>>, %arg10: memref<4x128xf32, #tpu.memory_space<vmem>>) attributes {dimension_semantics = [#tpu.dimension_semantics<parallel>], iteration_bounds = array<i64: 1>, scalar_prefetch = 0 : i64, scratch_operands = 0 : i64, tpu.core_type = #tpu.core_type<tc>, window_params = [{transform_indices = @transform_0, window_bounds = array<i64: 128, 48>}, {pipeline_mode = #tpu.pipeline_mode<synchronous>, transform_indices = @transform_1, window_bounds = array<i64: 48, 256>}, {pipeline_mode = #tpu.pipeline_mode<synchronous>, transform_indices = @transform_2, window_bounds = array<i64: 1, 256>}, {pipeline_mode = #tpu.pipeline_mode<synchronous>, transform_indices = @transform_3, window_bounds = array<i64: 256, 128>}, {pipeline_mode = #tpu.pipeline_mode<synchronous>, transform_indices = @transform_4, window_bounds = array<i64: 1, 128>}, {pipeline_mode = #tpu.pipeline_mode<synchronous>, transform_indices = @transform_5, window_bounds = array<i64: 64, 128>}, {pipeline_mode = #tpu.pipeline_mode<synchronous>, transform_indices = @transform_6, window_bounds = array<i64: 64, 1>}, {pipeline_mode = #tpu.pipeline_mode<synchronous>, transform_indices = @transform_7, window_bounds = array<i64: 4, 64>}, {pipeline_mode = #tpu.pipeline_mode<synchronous>, transform_indices = @transform_8, window_bounds = array<i64: 4, 1>}, {transform_indices = @transform_9, window_bounds = array<i64: 4, 128>}]} {
    %c0 = arith.constant 0 : index
    %c0_0 = arith.constant 0 : index
    %0 = vector.load %arg1[%c0, %c0_0] : memref<128x48xf32, #tpu.memory_space<vmem>>, vector<128x48xf32>
    %1 = arith.truncf %0 : vector<128x48xf32> to vector<128x48xbf16>
    %c0_1 = arith.constant 0 : index
    %c0_2 = arith.constant 0 : index
    %2 = vector.load %arg2[%c0_1, %c0_2] : memref<48x256xbf16, #tpu.memory_space<vmem>>, vector<48x256xbf16>
    %cst = arith.constant dense<0.000000e+00> : vector<128x256xf32>
    %3 = tpu.matmul %1, %2, %cst {dimension_numbers = #tpu.dot_dimension_numbers<[1], [0], [0], [1], [0, 0, 1, 1], [], []>} : vector<128x48xbf16>, vector<48x256xbf16>, vector<128x256xf32> -> vector<128x256xf32>
    %c0_3 = arith.constant 0 : index
    %c0_4 = arith.constant 0 : index
    %4 = vector.load %arg3[%c0_3, %c0_4] : memref<1x256xf32, #tpu.memory_space<vmem>>, vector<1x256xf32>
    %5 = vector.broadcast %4 : vector<1x256xf32> to vector<128x256xf32>
    %6 = arith.addf %3, %5 : vector<128x256xf32>
    %cst_5 = arith.constant 0.000000e+00 : f32
    %7 = vector.broadcast %cst_5 : f32 to vector<128x256xf32>
    %8 = arith.maximumf %6, %7 : vector<128x256xf32>
    %9 = arith.truncf %8 : vector<128x256xf32> to vector<128x256xbf16>
    %c0_6 = arith.constant 0 : index
    %c0_7 = arith.constant 0 : index
    %10 = vector.load %arg4[%c0_6, %c0_7] : memref<256x128xbf16, #tpu.memory_space<vmem>>, vector<256x128xbf16>
    %cst_8 = arith.constant dense<0.000000e+00> : vector<128x128xf32>
    %11 = tpu.matmul %9, %10, %cst_8 {dimension_numbers = #tpu.dot_dimension_numbers<[1], [0], [0], [1], [0, 0, 1, 1], [], []>} : vector<128x256xbf16>, vector<256x128xbf16>, vector<128x128xf32> -> vector<128x128xf32>
    %c0_9 = arith.constant 0 : index
    %c0_10 = arith.constant 0 : index
    %12 = vector.load %arg5[%c0_9, %c0_10] : memref<1x128xf32, #tpu.memory_space<vmem>>, vector<1x128xf32>
    %13 = vector.broadcast %12 : vector<1x128xf32> to vector<128x128xf32>
    %14 = arith.addf %11, %13 : vector<128x128xf32>
    %cst_11 = arith.constant 0.000000e+00 : f32
    %15 = vector.broadcast %cst_11 : f32 to vector<128x128xf32>
    %16 = arith.maximumf %14, %15 : vector<128x128xf32>
    %17 = arith.truncf %16 : vector<128x128xf32> to vector<128x128xbf16>
    %18 = tpu.transpose %17, [1, 0] : vector<128x128xbf16> -> vector<128x128xbf16>
    %c0_12 = arith.constant 0 : index
    %c0_13 = arith.constant 0 : index
    %19 = vector.load %arg6[%c0_12, %c0_13] : memref<64x128xbf16, #tpu.memory_space<vmem>>, vector<64x128xbf16>
    %cst_14 = arith.constant dense<0.000000e+00> : vector<64x128xf32>
    %20 = tpu.matmul %19, %18, %cst_14 {dimension_numbers = #tpu.dot_dimension_numbers<[1], [0], [0], [1], [0, 0, 1, 1], [], []>} : vector<64x128xbf16>, vector<128x128xbf16>, vector<64x128xf32> -> vector<64x128xf32>
    %c0_15 = arith.constant 0 : index
    %c0_16 = arith.constant 0 : index
    %21 = vector.load %arg7[%c0_15, %c0_16] : memref<64x1xf32, #tpu.memory_space<vmem>>, vector<64x1xf32>
    %22 = vector.broadcast %21 : vector<64x1xf32> to vector<64x128xf32>
    %23 = arith.addf %20, %22 : vector<64x128xf32>
    %cst_17 = arith.constant 0.000000e+00 : f32
    %24 = vector.broadcast %cst_17 : f32 to vector<64x128xf32>
    %25 = arith.maximumf %23, %24 : vector<64x128xf32>
    %26 = arith.truncf %25 : vector<64x128xf32> to vector<64x128xbf16>
    %c0_18 = arith.constant 0 : index
    %c0_19 = arith.constant 0 : index
    %27 = vector.load %arg8[%c0_18, %c0_19] : memref<4x64xbf16, #tpu.memory_space<vmem>>, vector<4x64xbf16>
    %cst_20 = arith.constant dense<0.000000e+00> : vector<4x128xf32>
    %28 = tpu.matmul %27, %26, %cst_20 {dimension_numbers = #tpu.dot_dimension_numbers<[1], [0], [0], [1], [0, 0, 1, 1], [], []>} : vector<4x64xbf16>, vector<64x128xbf16>, vector<4x128xf32> -> vector<4x128xf32>
    %c0_21 = arith.constant 0 : index
    %c0_22 = arith.constant 0 : index
    %29 = vector.load %arg9[%c0_21, %c0_22] : memref<4x1xf32, #tpu.memory_space<vmem>>, vector<4x1xf32>
    %30 = vector.broadcast %29 : vector<4x1xf32> to vector<4x128xf32>
    %31 = arith.addf %28, %30 : vector<4x128xf32>
    %cst_23 = arith.constant dense<0xFF800000> : vector<128xf32>
    %32 = vector.multi_reduction <maximumf>, %31, %cst_23 [0] : vector<4x128xf32> to vector<128xf32>
    %33 = vector.shape_cast %32 : vector<128xf32> to vector<1x128xf32>
    %34 = vector.broadcast %33 : vector<1x128xf32> to vector<4x128xf32>
    %35 = arith.subf %31, %34 : vector<4x128xf32>
    %36 = math.exp %35 : vector<4x128xf32>
    %cst_24 = arith.constant dense<0.000000e+00> : vector<128xf32>
    %37 = vector.multi_reduction <add>, %36, %cst_24 [0] : vector<4x128xf32> to vector<128xf32>
    %38 = vector.shape_cast %37 : vector<128xf32> to vector<1x128xf32>
    %39 = tpu.reciprocal %38 {approx = true} : vector<1x128xf32> -> vector<1x128xf32>
    %40 = vector.broadcast %39 : vector<1x128xf32> to vector<4x128xf32>
    %41 = arith.mulf %36, %40 : vector<4x128xf32>
    %c0_25 = arith.constant 0 : index
    %c0_26 = arith.constant 0 : index
    %42 = vector.load %arg10[%c0_25, %c0_26] : memref<4x128xf32, #tpu.memory_space<vmem>>, vector<4x128xf32>
    tpu.vector_store %arg10[%c0_25, %c0_26], %41 {strides = array<i32>} : memref<4x128xf32, #tpu.memory_space<vmem>>, vector<4x128xf32>,
    return
  }
  func.func @transform_0(%arg0: i32) -> (i32, i32) {
    %c0_i32 = arith.constant 0 : i32
    %c0_i32_0 = arith.constant 0 : i32
    return %arg0, %c0_i32 : i32, i32
  }
  func.func @transform_1(%arg0: i32) -> (i32, i32) {
    %c0_i32 = arith.constant 0 : i32
    %c0_i32_0 = arith.constant 0 : i32
    %c0_i32_1 = arith.constant 0 : i32
    return %c0_i32, %c0_i32_0 : i32, i32
  }
  func.func @transform_2(%arg0: i32) -> (i32, i32) {
    %c0_i32 = arith.constant 0 : i32
    %c0_i32_0 = arith.constant 0 : i32
    %c0_i32_1 = arith.constant 0 : i32
    return %c0_i32, %c0_i32_0 : i32, i32
  }
  func.func @transform_3(%arg0: i32) -> (i32, i32) {
    %c0_i32 = arith.constant 0 : i32
    %c0_i32_0 = arith.constant 0 : i32
    %c0_i32_1 = arith.constant 0 : i32
    return %c0_i32, %c0_i32_0 : i32, i32
  }
  func.func @transform_4(%arg0: i32) -> (i32, i32) {
    %c0_i32 = arith.constant 0 : i32
    %c0_i32_0 = arith.constant 0 : i32
    %c0_i32_1 = arith.constant 0 : i32
    return %c0_i32, %c0_i32_0 : i32, i32
  }
  func.func @transform_5(%arg0: i32) -> (i32, i32) {
    %c0_i32 = arith.constant 0 : i32
    %c0_i32_0 = arith.constant 0 : i32
    %c0_i32_1 = arith.constant 0 : i32
    return %c0_i32, %c0_i32_0 : i32, i32
  }
  func.func @transform_6(%arg0: i32) -> (i32, i32) {
    %c0_i32 = arith.constant 0 : i32
    %c0_i32_0 = arith.constant 0 : i32
    %c0_i32_1 = arith.constant 0 : i32
    return %c0_i32, %c0_i32_0 : i32, i32
  }
  func.func @transform_7(%arg0: i32) -> (i32, i32) {
    %c0_i32 = arith.constant 0 : i32
    %c0_i32_0 = arith.constant 0 : i32
    %c0_i32_1 = arith.constant 0 : i32
    return %c0_i32, %c0_i32_0 : i32, i32
  }
  func.func @transform_8(%arg0: i32) -> (i32, i32) {
    %c0_i32 = arith.constant 0 : i32
    %c0_i32_0 = arith.constant 0 : i32
    %c0_i32_1 = arith.constant 0 : i32
    return %c0_i32, %c0_i32_0 : i32, i32
  }
  func.func @transform_9(%arg0: i32) -> (i32, i32) {
    %c0_i32 = arith.constant 0 : i32
    %c0_i32_0 = arith.constant 0 : i32
    return %c0_i32, %arg0 : i32, i32
  }
}

</mosaic_0001>

<bundles_post_ra>
// kernel: policy_forward.1
= control target key start
LH: loop header
LB: loop body
LE: loop exit
PB: predicated region body
PF: predicated region fallthrough
CT: control target
= control target key end

     0   :  { %vm99_vm0 = vcmask 392192   ;;  %vm652_vm1 = vcmask 523264   ;;  %vm669_vm2 = vcmask 1043456   ;;  %s1166_s1 = inlined_call_operand.vmem [shape: bf16[48,256], index: 1, kind: input, shape index: {}]   ;;  %s1167_s0 = inlined_call_operand.vmem [shape: f32[128,48], index: 0, kind: input, shape index: {}]   ;;  %s1168_s3 = inlined_call_operand.vmem [shape: bf16[256,128], index: 3, kind: input, shape index: {}]   ;;  %s1169_s2 = inlined_call_operand.vmem [shape: f32[1,256], index: 2, kind: input, shape index: {}]   ;;  %s1170_s4 = inlined_call_operand.vmem [shape: f32[1,128], index: 4, kind: input, shape index: {}]   ;;  %s1171_s6 = inlined_call_operand.vmem [shape: f32[64,1], index: 6, kind: input, shape index: {}]   ;;  %s1172_s5 = inlined_call_operand.vmem [shape: bf16[64,128], index: 5, kind: input, shape index: {}]   ;;  %s1173_s8 = inlined_call_operand.vmem [shape: f32[4,1], index: 8, kind: input, shape index: {}]   ;;  %s1174_s7 = inlined_call_operand.vmem [shape: bf16[4,64], index: 7, kind: input, shape index: {}]   ;;  %s1175_s9 = inlined_call_operand.vmem [shape: f32[4,128], index: 9, kind: output, shape index: {}]  }
   0x1   :  { %v712_v0 = vld [vmem:[%s1166_s1 + $0x20] sm:$0xf]  ;;  %v820_v1 = vld [vmem:[%s1166_s1 + $0x24] sm:$0xf0]  ;;  %v819_v2 = vld [vmem:[%s1166_s1 + $0x24] sm:$0xf] }
   0x2   :  { %v713_v3 = vor.u32 %v820_v1, %v712_v0  ;;  %v714_v4 = vld [vmem:[%s1166_s1 + $0x28] sm:$0xf0]  ;;  %v704_v5 = vld [vmem:[%s1166_s1 + $0x10] sm:$0xf]  ;;  %v818_v6 = vld [vmem:[%s1166_s1 + $0x14] sm:$0xf0] }
   0x3   :  { %v717_v7 = vor.u32 %v819_v2, %v714_v4  ;;  %v817_v8 = vld [vmem:[%s1166_s1 + $0x14] sm:$0xf]  ;;  %v706_v9 = vld [vmem:[%s1166_s1 + $0x18] sm:$0xf0]  ;;  %v705_v10 = vor.u32 %v818_v6, %v704_v5  ;;  %v696_v12 = vld [vmem:[%s1166_s1] sm:$0xf] }
   0x4   :  { %129 = vmatpush.bf16.msra.mxu0 %v713_v3  ;;  %841 = vmatpush.bf16.msra.mxu2 %v713_v3  ;;  %v709_v11 = vor.u32 %v817_v8, %v706_v9  ;;  %v816_v13 = vld [vmem:[%s1166_s1 + $0x4] sm:$0xf0]  ;;  %v815_v14 = vld [vmem:[%s1166_s1 + $0x4] sm:$0xf]  ;;  %v698_v15 = vld [vmem:[%s1166_s1 + $0x8] sm:$0xf0] }
   0x5   :  { %178 = vmatpush.bf16.msra.mxu1 %v717_v7  ;;  %v697_v16 = vor.u32 %v816_v13, %v696_v12  ;;  %v33_v17 = vld [vmem:[%s1167_s0] sm:$0xff]  ;;  %v34_v18 = vld [vmem:[%s1167_s0 + $0x8] sm:$0xff]  ;;  %v701_v19 = vor.u32 %v815_v14, %v698_v15  ;;  %v35_v21 = vld [vmem:[%s1167_s0 + $0x10] sm:$0xff] }
   0x6   :  { %v49_v20 = vpack.c.bf16 %v34_v18, %v33_v17  ;;  %v36_v22 = vld [vmem:[%s1167_s0 + $0x18] sm:$0xff]  ;;  %v37_v24 = vld [vmem:[%s1167_s0 + $0x20] sm:$0xff]  ;;  %v38_v25 = vld [vmem:[%s1167_s0 + $0x28] sm:$0xff] }
   0x7   :  { %v50_v23 = vpack.c.bf16 %v36_v22, %v35_v21  ;;  %v51_v26 = vpack.c.bf16 %v38_v25, %v37_v24  ;;  %v39_v27 = vld [vmem:[%s1167_s0 + $0x30] sm:$0xff]  ;;  %v40_v28 = vld [vmem:[%s1167_s0 + $0x38] sm:$0xff]  ;;  %v45_v30 = vld [vmem:[%s1167_s0 + $0x60] sm:$0xff] }
   0x8   :  { %130 = vmatpush.bf16.msra.mxu0 %v705_v10  ;;  %842 = vmatpush.bf16.msra.mxu2 %v705_v10  ;;  %v52_v29 = vpack.c.bf16 %v40_v28, %v39_v27  ;;  %v46_v31 = vld [vmem:[%s1167_s0 + $0x68] sm:$0xff]  ;;  %v41_v33 = vld [vmem:[%s1167_s0 + $0x40] sm:$0xff]  ;;  %v47_v36 = vld [vmem:[%s1167_s0 + $0x70] sm:$0xff] }
   0x9   :  { %179 = vmatpush.bf16.msra.mxu1 %v709_v11  ;;  %v55_v32 = vpack.c.bf16 %v46_v31, %v45_v30  ;;  %v42_v34 = vld [vmem:[%s1167_s0 + $0x48] sm:$0xff]  ;;  %v48_v37 = vld [vmem:[%s1167_s0 + $0x78] sm:$0xff]  ;;  %v43_v41 = vld [vmem:[%s1167_s0 + $0x50] sm:$0xff] }
   0xa   :  { %v53_v35 = vpack.c.bf16 %v42_v34, %v41_v33  ;;  %v56_v38 = vpack.c.bf16 %v48_v37, %v47_v36  ;;  %v828_v39 = vld [vmem:[%s1168_s3 + $0x38] sm:$0xff]  ;;  %v827_v44 = vld [vmem:[%s1168_s3 + $0x30] sm:$0xff]  ;;  %v826_v46 = vld [vmem:[%s1168_s3 + $0x28] sm:$0xff] }
   0xb   :  { %v836_v40 = vld [vmem:[%s1168_s3 + $0x78] sm:$0xff]  ;;  %v835_v45 = vld [vmem:[%s1168_s3 + $0x70] sm:$0xff]  ;;  %v834_v47 = vld [vmem:[%s1168_s3 + $0x68] sm:$0xff] }
   0xc   :  { %131 = vmatpush.bf16.msra.mxu0 %v697_v16  ;;  %843 = vmatpush.bf16.msra.mxu2 %v697_v16  ;;  %v44_v42 = vld [vmem:[%s1167_s0 + $0x58] sm:$0xff]  ;;  %v825_v48 = vld [vmem:[%s1168_s3 + $0x20] sm:$0xff]  ;;  %v823_v52 = vld [vmem:[%s1168_s3 + $0x10] sm:$0xff] }
   0xd   :  { %180 = vmatpush.bf16.msra.mxu1 %v701_v19  ;;  %451 = vmatpush.bf16.msra.mxu3 %v836_v40  ;;  %v54_v43 = vpack.c.bf16 %v44_v42, %v43_v41  ;;  %v833_v49 = vld [vmem:[%s1168_s3 + $0x60] sm:$0xff]  ;;  %v824_v50 = vld [vmem:[%s1168_s3 + $0x18] sm:$0xff]  ;;  %v831_v53 = vld [vmem:[%s1168_s3 + $0x50] sm:$0xff] }
   0xe   :  { %v832_v51 = vld [vmem:[%s1168_s3 + $0x58] sm:$0xff]  ;;  %v822_v54 = vld [vmem:[%s1168_s3 + $0x8] sm:$0xff]  ;;  %v821_v56 = vld [vmem:[%s1168_s3] sm:$0xff] }
   0xf   :  { %718 = vmatmul.msk.bf16.vlgmr.msra.gmra.mxu0 %vm99_vm0, %v49_v20  ;;  %724 = vmatmul.msk.bf16.vlgmr.msra.gmra.mxu2 %vm99_vm0, %v55_v32  ;;  %v830_v55 = vld [vmem:[%s1168_s3 + $0x48] sm:$0xff]  ;;  %v829_v57 = vld [vmem:[%s1168_s3 + $0x40] sm:$0xff] }
  0x10   :  { %726 = vmatmul.msk.bf16.vlgmr.msra.gmra.mxu1 %vm99_vm0, %v49_v20  ;;  %402 = vmatpush.bf16.msrb.mxu2 %v828_v39  ;;  %v63_v58 = vld [vmem:[%s1169_s2] sm:$0x3] }
  0x11   :  { %452 = vmatpush.bf16.msra.mxu3 %v835_v45  ;;  %v1055_v61 = vperm.slane %v63_v58, 0  ;;  %v1057_v62 = vperm.slane %v63_v58, 1 }
  0x14   :  { %403 = vmatpush.bf16.msrb.mxu2 %v827_v44 }
  0x15   :  { %453 = vmatpush.bf16.msra.mxu3 %v834_v47 }
  0x18   :  { %404 = vmatpush.bf16.msrb.mxu2 %v826_v46 }
  0x19   :  { %454 = vmatpush.bf16.msra.mxu3 %v833_v49 }
  0x1c   :  { %405 = vmatpush.bf16.msrb.mxu2 %v825_v48 }
  0x1d   :  { %455 = vmatpush.bf16.msra.mxu3 %v832_v51 }
  0x1f   :  { %719 = vmatmul.msk.bf16.gmra.mxu0 %vm99_vm0, %v50_v23  ;;  %725 = vmatmul.msk.bf16.gmra.mxu2 %vm99_vm0, %v56_v38 }
  0x20   :  { %727 = vmatmul.msk.bf16.gmra.mxu1 %vm99_vm0, %v50_v23  ;;  %406 = vmatpush.bf16.msrb.mxu2 %v824_v50 }
  0x21   :  { %456 = vmatpush.bf16.msra.mxu3 %v831_v53 }
  0x24   :  { %407 = vmatpush.bf16.msrb.mxu2 %v823_v52 }
  0x25   :  { %457 = vmatpush.bf16.msra.mxu3 %v830_v55 }
  0x28   :  { %408 = vmatpush.bf16.msrb.mxu2 %v822_v54 }
  0x29   :  { %458 = vmatpush.bf16.msra.mxu3 %v829_v57 }
  0x2c   :  { %409 = vmatpush.bf16.msrb.mxu2 %v821_v56 }
  0x2f   :  { %720 = vmatmul.msk.bf16.gmra.mxu0 %vm99_vm0, %v51_v26 }
  0x30   :  { %728 = vmatmul.msk.bf16.gmra.mxu1 %vm99_vm0, %v51_v26 }
  0x3f   :  { %721 = vmatmul.msk.bf16.gmra.mxu0 %vm99_vm0, %v52_v29 }
  0x40   :  { %729 = vmatmul.msk.bf16.gmra.mxu1 %vm99_vm0, %v52_v29 }
  0x4f   :  { %722 = vmatmul.msk.bf16.gmra.mxu0 %vm99_vm0, %v53_v35 }
  0x50   :  { %730 = vmatmul.msk.bf16.gmra.mxu1 %vm99_vm0, %v53_v35 }
  0x5f   :  { %723 = vmatmul.msk.bf16.gmra.mxu0 %vm99_vm0, %v54_v43 }
  0x60   :  { %731 = vmatmul.msk.bf16.gmra.mxu1 %vm99_vm0, %v54_v43 }
  0x70   :  { %732 = vmatmul.msk.bf16.gmra.mxu1 %vm99_vm0, %v55_v32 }
  0x80   :  { %733 = vmatmul.msk.bf16.gmra.mxu1 %vm99_vm0, %v56_v38 }
  0x8c   :  { %v133_v59 = vpop.f32.mrf.mxu0 }
  0x8d   :  { %v182_v60 = vpop.f32.mrf.mxu1  ;;  %v134_v63 = vadd.f32 %v133_v59, %v1055_v61 }
  0x8e   :  { %v183_v0 = vadd.f32 %v182_v60, %v1057_v62 }
  0x8f   :  { %v222_v5 = vmax.f32 %v134_v63, 0.0 }
  0x90   :  { %v223_v7 = vmax.f32 %v183_v0, 0.0 }
  0x94   :  { %v135_v1 = vpop.f32.mrf.mxu0 }
  0x95   :  { %v136_v2 = vadd.f32 %v135_v1, %v1055_v61  ;;  %v184_v3 = vpop.f32.mrf.mxu1 }
  0x96   :  { %v185_v4 = vadd.f32 %v184_v3, %v1057_v62 }
  0x97   :  { %v224_v6 = vmax.f32 %v136_v2, 0.0 }
  0x98   :  { %v225_v8 = vmax.f32 %v185_v4, 0.0 }
  0x99   :  { %v254_v9 = vpack.c.bf16 %v224_v6, %v222_v5 }
  0x9a   :  { %v255_v10 = vpack.c.bf16 %v225_v8, %v223_v7  ;;  %v163_v7 = vpop.f32.mrf.mxu2 }
  0x9b   :  { %410 = vmatmul.bf16.vlgmr.msrb.gmra.mxu2 %v254_v9 }
  0x9c   :  { %459 = vmatmul.bf16.vlgmr.msra.gmra.mxu3 %v255_v10  ;;  %v138_v11 = vpop.f32.mrf.mxu0 }
  0x9d   :  { %v187_v12 = vpop.f32.mrf.mxu1  ;;  %v139_v13 = vadd.f32 %v138_v11, %v1055_v61 }
  0x9e   :  { %v188_v14 = vadd.f32 %v187_v12, %v1057_v62 }
  0x9f   :  { %v226_v19 = vmax.f32 %v139_v13, 0.0 }
  0xa0   :  { %v227_v21 = vmax.f32 %v188_v14, 0.0 }
  0xa4   :  { %v140_v15 = vpop.f32.mrf.mxu0 }
  0xa5   :  { %v141_v16 = vadd.f32 %v140_v15, %v1055_v61  ;;  %v189_v17 = vpop.f32.mrf.mxu1 }
  0xa6   :  { %v190_v18 = vadd.f32 %v189_v17, %v1057_v62 }
  0xa7   :  { %v228_v20 = vmax.f32 %v141_v16, 0.0 }
  0xa8   :  { %v229_v22 = vmax.f32 %v190_v18, 0.0 }
  0xa9   :  { %v256_v23 = vpack.c.bf16 %v228_v20, %v226_v19  ;;  %v165_v20 = vpop.f32.mrf.mxu2 }
  0xaa   :  { %v257_v24 = vpack.c.bf16 %v229_v22, %v227_v21  ;;  %v164_v22 = vadd.f32 %v163_v7, %v1055_v61 }
  0xab   :  { %415 = vmatmul.bf16.gmra.mxu2 %v256_v23  ;;  %v166_v23 = vadd.f32 %v165_v20, %v1055_v61 }
  0xac   :  { %464 = vmatmul.bf16.gmra.mxu3 %v257_v24  ;;  %v143_v25 = vpop.f32.mrf.mxu0 }
  0xad   :  { %v192_v26 = vpop.f32.mrf.mxu1  ;;  %v144_v27 = vadd.f32 %v143_v25, %v1055_v61 }
  0xae   :  { %v193_v28 = vadd.f32 %v192_v26, %v1057_v62  ;;  %v246_v26 = vmax.f32 %v164_v22, 0.0 }
  0xaf   :  { %v230_v33 = vmax.f32 %v144_v27, 0.0  ;;  %v248_v27 = vmax.f32 %v166_v23, 0.0 }
  0xb0   :  { %v231_v35 = vmax.f32 %v193_v28, 0.0 }
  0xb1   :  { %v168_v25 = vpop.f32.mrf.mxu2 }
  0xb4   :  { %v145_v29 = vpop.f32.mrf.mxu0 }
  0xb5   :  { %v146_v30 = vadd.f32 %v145_v29, %v1055_v61  ;;  %v194_v31 = vpop.f32.mrf.mxu1 }
  0xb6   :  { %v195_v32 = vadd.f32 %v194_v31, %v1057_v62 }
  0xb7   :  { %v232_v34 = vmax.f32 %v146_v30, 0.0 }
  0xb8   :  { %v233_v36 = vmax.f32 %v195_v32, 0.0  ;;  %v266_v32 = vpack.c.bf16 %v248_v27, %v246_v26 }
  0xb9   :  { %v258_v37 = vpack.c.bf16 %v232_v34, %v230_v33 }
  0xba   :  { %v259_v38 = vpack.c.bf16 %v233_v36, %v231_v35  ;;  %v170_v35 = vpop.f32.mrf.mxu2  ;;  %v169_v36 = vadd.f32 %v168_v25, %v1055_v61 }
  0xbb   :  { %420 = vmatmul.bf16.gmra.mxu2 %v258_v37  ;;  %v171_v37 = vadd.f32 %v170_v35, %v1055_v61 }
  0xbc   :  { %469 = vmatmul.bf16.gmra.mxu3 %v259_v38  ;;  %v148_v39 = vpop.f32.mrf.mxu0 }
  0xbd   :  { %v197_v40 = vpop.f32.mrf.mxu1  ;;  %v149_v41 = vadd.f32 %v148_v39, %v1055_v61  ;;  %v250_v39 = vmax.f32 %v169_v36, 0.0 }
  0xbe   :  { %v198_v42 = vadd.f32 %v197_v40, %v1057_v62  ;;  %v252_v40 = vmax.f32 %v171_v37, 0.0 }
  0xbf   :  { %v234_v47 = vmax.f32 %v149_v41, 0.0 }
  0xc0   :  { %v235_v49 = vmax.f32 %v198_v42, 0.0 }
  0xc4   :  { %v150_v43 = vpop.f32.mrf.mxu0 }
  0xc5   :  { %v151_v44 = vadd.f32 %v150_v43, %v1055_v61  ;;  %v199_v45 = vpop.f32.mrf.mxu1 }
  0xc6   :  { %v200_v46 = vadd.f32 %v199_v45, %v1057_v62  ;;  %v268_v45 = vpack.c.bf16 %v252_v40, %v250_v39 }
  0xc7   :  { %v236_v48 = vmax.f32 %v151_v44, 0.0 }
  0xc8   :  { %v237_v50 = vmax.f32 %v200_v46, 0.0 }
  0xc9   :  { %v260_v51 = vpack.c.bf16 %v236_v48, %v234_v47  ;;  %v1094_v47 = vld [vmem:[%s1170_s4] ss:$0 sm:$0xff] }
  0xca   :  { %v261_v52 = vpack.c.bf16 %v237_v50, %v235_v49 }
  0xcb   :  { %425 = vmatmul.bf16.gmra.mxu2 %v260_v51 }
  0xcc   :  { %474 = vmatmul.bf16.gmra.mxu3 %v261_v52  ;;  %v153_v53 = vpop.f32.mrf.mxu0 }
  0xcd   :  { %v202_v54 = vpop.f32.mrf.mxu1  ;;  %v154_v55 = vadd.f32 %v153_v53, %v1055_v61 }
  0xce   :  { %v203_v56 = vadd.f32 %v202_v54, %v1057_v62 }
  0xcf   :  { %v238_v63 = vmax.f32 %v154_v55, 0.0 }
  0xd0   :  { %v239_v1 = vmax.f32 %v203_v56, 0.0 }
  0xd4   :  { %v155_v57 = vpop.f32.mrf.mxu0 }
  0xd5   :  { %v156_v58 = vadd.f32 %v155_v57, %v1055_v61  ;;  %v204_v59 = vpop.f32.mrf.mxu1 }
  0xd6   :  { %v205_v60 = vadd.f32 %v204_v59, %v1057_v62 }
  0xd7   :  { %v240_v0 = vmax.f32 %v156_v58, 0.0 }
  0xd8   :  { %v241_v2 = vmax.f32 %v205_v60, 0.0 }
  0xd9   :  { %v262_v3 = vpack.c.bf16 %v240_v0, %v238_v63 }
  0xda   :  { %v263_v4 = vpack.c.bf16 %v241_v2, %v239_v1 }
  0xdb   :  { %430 = vmatmul.bf16.gmra.mxu2 %v262_v3 }
  0xdc   :  { %479 = vmatmul.bf16.gmra.mxu3 %v263_v4  ;;  %v158_v5 = vpop.f32.mrf.mxu0 }
  0xdd   :  { %v207_v6 = vpop.f32.mrf.mxu1  ;;  %v159_v8 = vadd.f32 %v158_v5, %v1055_v61 }
  0xde   :  { %v208_v9 = vadd.f32 %v207_v6, %v1057_v62 }
  0xdf   :  { %v242_v14 = vmax.f32 %v159_v8, 0.0 }
  0xe0   :  { %v243_v16 = vmax.f32 %v208_v9, 0.0 }
  0xe4   :  { %v160_v10 = vpop.f32.mrf.mxu0 }
  0xe5   :  { %v161_v11 = vadd.f32 %v160_v10, %v1055_v61  ;;  %v209_v12 = vpop.f32.mrf.mxu1 }
  0xe6   :  { %v210_v13 = vadd.f32 %v209_v12, %v1057_v62 }
  0xe7   :  { %v244_v15 = vmax.f32 %v161_v11, 0.0 }
  0xe8   :  { %v245_v17 = vmax.f32 %v210_v13, 0.0 }
  0xe9   :  { %v264_v18 = vpack.c.bf16 %v244_v15, %v242_v14 }
  0xea   :  { %v265_v19 = vpack.c.bf16 %v245_v17, %v243_v16 }
  0xeb   :  { %435 = vmatmul.bf16.gmra.mxu2 %v264_v18 }
  0xec   :  { %484 = vmatmul.bf16.gmra.mxu3 %v265_v19 }
  0xed   :  { %v212_v21 = vpop.f32.mrf.mxu1 }
  0xee   :  { %v213_v24 = vadd.f32 %v212_v21, %v1057_v62 }
  0xf0   :  { %v247_v30 = vmax.f32 %v213_v24, 0.0 }
  0xf5   :  { %v214_v28 = vpop.f32.mrf.mxu1 }
  0xf6   :  { %v215_v29 = vadd.f32 %v214_v28, %v1057_v62 }
  0xf8   :  { %v249_v31 = vmax.f32 %v215_v29, 0.0 }
  0xfa   :  { %v267_v33 = vpack.c.bf16 %v249_v31, %v247_v30 }
  0xfb   :  { %440 = vmatmul.bf16.gmra.mxu2 %v266_v32 }
  0xfc   :  { %489 = vmatmul.bf16.gmra.mxu3 %v267_v33 }
  0xfd   :  { %v217_v34 = vpop.f32.mrf.mxu1 }
  0xfe   :  { %v218_v38 = vadd.f32 %v217_v34, %v1057_v62 }
 0x100   :  { %v251_v43 = vmax.f32 %v218_v38, 0.0 }
 0x105   :  { %v219_v41 = vpop.f32.mrf.mxu1 }
 0x106   :  { %v220_v42 = vadd.f32 %v219_v41, %v1057_v62 }
 0x108   :  { %v253_v44 = vmax.f32 %v220_v42, 0.0 }
 0x10a   :  { %v269_v46 = vpack.c.bf16 %v253_v44, %v251_v43 }
 0x10b   :  { %445 = vmatmul.bf16.gmra.mxu2 %v268_v45 }
 0x10c   :  { %494 = vmatmul.bf16.gmra.mxu3 %v269_v46 }
 0x11e   :  { %v411_v48 = vpop.f32.mrf.mxu2 }
 0x11f   :  { %v412_v61 = vadd.f32 %v1094_v47, %v411_v48  ;;  %v460_v49 = vpop.f32.mrf.mxu3 }
 0x121   :  { %v461_v50 = vadd.f32 %v460_v49, %v412_v61 }
 0x123   :  { %v500_v54 = vmax.f32 %v461_v50, 0.0 }
 0x126   :  { %v413_v51 = vpop.f32.mrf.mxu2 }
 0x127   :  { %v414_v52 = vadd.f32 %v1094_v47, %v413_v51  ;;  %v462_v62 = vpop.f32.mrf.mxu3 }
 0x129   :  { %v463_v53 = vadd.f32 %v462_v62, %v414_v52 }
 0x12b   :  { %v501_v55 = vmax.f32 %v463_v53, 0.0 }
 0x12d   :  { %v1098_v56 = vpack.c.bf16 %v501_v55, %v500_v54 }
 0x12e   :  { %v416_v57 = vpop.f32.mrf.mxu2 }
 0x12f   :  { %v417_v58 = vadd.f32 %v1094_v47, %v416_v57  ;;  %v465_v59 = vpop.f32.mrf.mxu3 }
 0x131   :  { %v466_v60 = vadd.f32 %v465_v59, %v417_v58 }
 0x133   :  { %v502_v3 = vmax.f32 %v466_v60, 0.0 }
 0x136   :  { %v418_v63 = vpop.f32.mrf.mxu2 }
 0x137   :  { %v419_v0 = vadd.f32 %v1094_v47, %v418_v63  ;;  %v467_v1 = vpop.f32.mrf.mxu3 }
 0x139   :  { %v468_v2 = vadd.f32 %v467_v1, %v419_v0 }
 0x13b   :  { %v503_v4 = vmax.f32 %v468_v2, 0.0 }
 0x13d   :  { %v1102_v5 = vpack.c.bf16 %v503_v4, %v502_v3 }
 0x13e   :  { %v421_v6 = vpop.f32.mrf.mxu2 }
 0x13f   :  { %v422_v7 = vadd.f32 %v1094_v47, %v421_v6  ;;  %v470_v8 = vpop.f32.mrf.mxu3 }
 0x141   :  { %v471_v9 = vadd.f32 %v470_v8, %v422_v7 }
 0x143   :  { %v504_v14 = vmax.f32 %v471_v9, 0.0 }
 0x146   :  { %v423_v10 = vpop.f32.mrf.mxu2 }
 0x147   :  { %v424_v11 = vadd.f32 %v1094_v47, %v423_v10  ;;  %v472_v12 = vpop.f32.mrf.mxu3 }
 0x149   :  { %v473_v13 = vadd.f32 %v472_v12, %v424_v11  ;;  %v538_v11 = vld [vmem:[%s1171_s6 + $0x30] sm:$0xff]  ;;  %v853_v12 = vmov 0  }
 0x14a   :  { %845 = vset.pattern.permute.xlu0 %v853_v12  ;;  %846 = vset.pattern.permute.xlu1 %v853_v12 }
 0x14b   :  { %v505_v15 = vmax.f32 %v473_v13, 0.0  ;;  %572 = vperm.xlu0 %845, %v538_v11   ;;  %847 = vset.pattern.permute.xlu2 %v853_v12  ;;  %v536_v13 = vld [vmem:[%s1171_s6 + $0x20] sm:$0xff] }
 0x14c   :  { %562 = vperm.xlu1 %846, %v536_v13  }
 0x14d   :  { %v1106_v16 = vpack.c.bf16 %v505_v15, %v504_v14  ;;  %v537_v14 = vld [vmem:[%s1171_s6 + $0x28] sm:$0xff]  ;;  %v532_v15 = vld [vmem:[%s1171_s6] sm:$0xff] }
 0x14e   :  { %v426_v17 = vpop.f32.mrf.mxu2 }
 0x14f   :  { %v427_v18 = vadd.f32 %v1094_v47, %v426_v17  ;;  %v475_v19 = vpop.f32.mrf.mxu3  ;;  %v533_v17 = vld [vmem:[%s1171_s6 + $0x8] sm:$0xff] }
 0x151   :  { %v476_v20 = vadd.f32 %v475_v19, %v427_v18  ;;  %v837_v18 = vld [vmem:[%s1172_s5] sm:$0xff]  ;;  %v534_v19 = vld [vmem:[%s1171_s6 + $0x10] sm:$0xff] }
 0x152   :  { %552 = vperm.xlu2 %847, %v534_v19  }
 0x153   :  { %v506_v25 = vmax.f32 %v476_v20, 0.0  ;;  %v840_v20 = vld [vmem:[%s1172_s5 + $0x18] sm:$0xff] }
 0x154   :  { %567 = vperm.xlu1 %846, %v537_v14  }
 0x156   :  { %v428_v21 = vpop.f32.mrf.mxu2 }
 0x157   :  { %v429_v22 = vadd.f32 %v1094_v47, %v428_v21  ;;  %v477_v23 = vpop.f32.mrf.mxu3  ;;  %v646_v21 = vld [vmem:[%s1173_s8] sm:$0xf] }
 0x159   :  { %v478_v24 = vadd.f32 %v477_v23, %v429_v22 }
 0x15b   :  { %v507_v26 = vmax.f32 %v478_v24, 0.0 }
 0x15c   :  { %547 = vperm.xlu1 %846, %v533_v17  }
 0x15d   :  { %v519_v27 = vpack.c.bf16 %v507_v26, %v506_v25 }
 0x15e   :  { %v431_v28 = vpop.f32.mrf.mxu2 }
 0x15f   :  { %v432_v29 = vadd.f32 %v1094_v47, %v431_v28  ;;  %v480_v30 = vpop.f32.mrf.mxu3 }
 0x161   :  { %v481_v31 = vadd.f32 %v480_v30, %v432_v29 }
 0x163   :  { %v508_v36 = vmax.f32 %v481_v31, 0.0 }
 0x166   :  { %v433_v32 = vpop.f32.mrf.mxu2 }
 0x167   :  { %v434_v33 = vadd.f32 %v1094_v47, %v433_v32  ;;  %v482_v34 = vpop.f32.mrf.mxu3 }
 0x169   :  { %v483_v35 = vadd.f32 %v482_v34, %v434_v33 }
 0x16b   :  { %v509_v37 = vmax.f32 %v483_v35, 0.0 }
 0x16d   :  { %v520_v38 = vpack.c.bf16 %v509_v37, %v508_v36 }
 0x16e   :  { %v436_v39 = vpop.f32.mrf.mxu2 }
 0x16f   :  { %v485_v40 = vpop.f32.mrf.mxu3  ;;  %v437_v2 = vadd.f32 %v1094_v47, %v436_v39 }
 0x171   :  { %v486_v7 = vadd.f32 %v485_v40, %v437_v2 }
 0x173   :  { %v510_v9 = vmax.f32 %v486_v7, 0.0 }
 0x176   :  { %v438_v41 = vpop.f32.mrf.mxu2 }
 0x177   :  { %v487_v42 = vpop.f32.mrf.mxu3  ;;  %v439_v0 = vadd.f32 %v1094_v47, %v438_v41 }
 0x179   :  { %v488_v4 = vadd.f32 %v487_v42, %v439_v0 }
 0x17b   :  { %v511_v8 = vmax.f32 %v488_v4, 0.0 }
 0x17d   :  { %v521_v10 = vpack.c.bf16 %v511_v8, %v510_v9 }
 0x17e   :  { %v441_v43 = vpop.f32.mrf.mxu2 }
 0x17f   :  { %v490_v44 = vpop.f32.mrf.mxu3  ;;  %v442_v55 = vadd.f32 %v1094_v47, %v441_v43 }
 0x181   :  { %v491_v63 = vadd.f32 %v490_v44, %v442_v55 }
 0x183   :  { %v512_v3 = vmax.f32 %v491_v63, 0.0 }
 0x186   :  { %v443_v45 = vpop.f32.mrf.mxu2 }
 0x187   :  { %v492_v46 = vpop.f32.mrf.mxu3  ;;  %v444_v53 = vadd.f32 %v1094_v47, %v443_v45 }
 0x189   :  { %v493_v59 = vadd.f32 %v492_v46, %v444_v53 }
 0x18b   :  { %v513_v1 = vmax.f32 %v493_v59, 0.0 }
 0x18d   :  { %v522_v6 = vpack.c.bf16 %v513_v1, %v512_v3 }
 0x18e   :  { %v446_v48 = vpop.f32.mrf.mxu2 }
 0x18f   :  { %v495_v61 = vpop.f32.mrf.mxu3  ;;  %v447_v49 = vadd.f32 %v1094_v47, %v446_v48 }
 0x191   :  { %v496_v51 = vadd.f32 %v495_v61, %v447_v49 }
 0x193   :  { %v514_v57 = vmax.f32 %v496_v51, 0.0 }
 0x196   :  { %v448_v50 = vpop.f32.mrf.mxu2 }
 0x197   :  { %v449_v52 = vadd.f32 %v1094_v47, %v448_v50  ;;  %v497_v62 = vpop.f32.mrf.mxu3  ;;  %v539_v47 = vld [vmem:[%s1171_s6 + $0x38] sm:$0xff] }
 0x198   :  { %577 = vperm.xlu0 %845, %v539_v47  }
 0x199   :  { %v498_v54 = vadd.f32 %v497_v62, %v449_v52 }
 0x19b   :  { %v515_v58 = vmax.f32 %v498_v54, 0.0 }
 0x19d   :  { %v523_v60 = vpack.c.bf16 %v515_v58, %v514_v57  ;;  %v645_v58 = vld [vmem:[%s1174_s7] sm:$0x3] }
 0x19f   :  { %604 = vmatpush.bf16.xpose.msrb.mxu0 %v523_v60 }
 0x1a0   :  { %542 = vperm.xlu0 %845, %v532_v15  }
 0x1a7   :  { %605 = vmatpush.bf16.xpose.msrb.mxu0 %v522_v6 }
 0x1ac   :  { %v553_v30 = vpop.permute.xlu2 %552 }
 0x1af   :  { %606 = vmatpush.bf16.xpose.msrb.mxu0 %v521_v10 }
 0x1b7   :  { %607 = vmatpush.bf16.xpose.msrb.mxu0 %v520_v38 }
 0x1bd   :  { %v573_v29 = vpop.permute.xlu0 %572 }
 0x1be   :  { %v563_v28 = vpop.permute.xlu1 %562 }
 0x1bf   :  { %608 = vmatpush.bf16.xpose.msrb.mxu0 %v519_v27 }
 0x1c6   :  { %v568_v32 = vpop.permute.xlu1 %567 }
 0x1c7   :  { %609 = vmatpush.bf16.xpose.msrb.mxu0 %v1106_v16  ;;  %v838_v16 = vld [vmem:[%s1172_s5 + $0x8] sm:$0xff] }
 0x1ce   :  { %v548_v45 = vpop.permute.xlu1 %547 }
 0x1cf   :  { %610 = vmatpush.bf16.xpose.msrb.mxu0 %v1102_v5  ;;  %v535_v5 = vld [vmem:[%s1171_s6 + $0x18] sm:$0xff] }
 0x1d0   :  { %557 = vperm.xlu2 %847, %v535_v5  }
 0x1d7   :  { %611 = vmatpush.bf16.xpose.msrb.mxu0 %v1098_v56  ;;  %v839_v56 = vld [vmem:[%s1172_s5 + $0x10] sm:$0xff] }
 0x1d8   :  { %649 = vperm.xlu2 %847, %v646_v21  }
 0x1de   :  { %612 = vmatmul.bf16.vlgmr.msrb.gmra.mxu0 %v837_v18 }
 0x1ee   :  { %617 = vmatmul.bf16.gmra.mxu0 %v838_v16 }
 0x1fe   :  { %622 = vmatmul.bf16.gmra.mxu0 %v839_v56 }
 0x20a   :  { %v578_v33 = vpop.permute.xlu0 %577 }
 0x20e   :  { %627 = vmatmul.bf16.gmra.mxu0 %v840_v20 }
 0x212   :  { %v543_v61 = vpop.permute.xlu0 %542 }
 0x22a   :  { %v558_v38 = vpop.permute.xlu2 %557 }
 0x232   :  { %v650_v59 = vpop.permute.xlu2 %649 }
 0x25b   :  { %v613_v22 = vpop.f32.mrf.mxu0 }
 0x25c   :  { %v614_v52 = vadd.f32 %v613_v22, %v543_v61 }
 0x25e   :  { %v633_v55 = vmax.f32 %v614_v52, 0.0 }
 0x263   :  { %v615_v23 = vpop.f32.mrf.mxu0 }
 0x264   :  { %v616_v49 = vadd.f32 %v615_v23, %v548_v45 }
 0x266   :  { %v634_v53 = vmax.f32 %v616_v49, 0.0 }
 0x268   :  { %v641_v57 = vpack.c.bf16 %v634_v53, %v633_v55 }
 0x26b   :  { %v618_v24 = vpop.f32.mrf.mxu0 }
 0x26c   :  { %v619_v46 = vadd.f32 %v618_v24, %v553_v30 }
 0x26e   :  { %v635_v62 = vmax.f32 %v619_v46, 0.0 }
 0x273   :  { %v620_v25 = vpop.f32.mrf.mxu0 }
 0x274   :  { %v621_v42 = vadd.f32 %v620_v25, %v558_v38 }
 0x276   :  { %v636_v50 = vmax.f32 %v621_v42, 0.0 }
 0x278   :  { %v642_v54 = vpack.c.bf16 %v636_v50, %v635_v62 }
 0x27b   :  { %v623_v26 = vpop.f32.mrf.mxu0 }
 0x27c   :  { %v624_v39 = vadd.f32 %v623_v26, %v563_v28 }
 0x27e   :  { %v637_v48 = vmax.f32 %v624_v39, 0.0 }
 0x283   :  { %v625_v27 = vpop.f32.mrf.mxu0 }
 0x284   :  { %v626_v36 = vadd.f32 %v625_v27, %v568_v32 }
 0x286   :  { %v638_v43 = vmax.f32 %v626_v36, 0.0 }
 0x288   :  { %v643_v51 = vpack.c.bf16 %v638_v43, %v637_v48 }
 0x28b   :  { %v628_v31 = vpop.f32.mrf.mxu0 }
 0x28c   :  { %v629_v34 = vadd.f32 %v628_v31, %v573_v29 }
 0x28e   :  { %v639_v40 = vmax.f32 %v629_v34, 0.0 }
 0x293   :  { %v630_v35 = vpop.f32.mrf.mxu0 }
 0x294   :  { %v631_v37 = vadd.f32 %v630_v35, %v578_v33 }
 0x296   :  { %v640_v41 = vmax.f32 %v631_v37, 0.0 }
 0x298   :  { %v644_v44 = vpack.c.bf16 %v640_v41, %v639_v40 }
 0x29a   :  { %660 = vmatpush.bf16.msrb.mxu1 %v644_v44 }
 0x29e   :  { %661 = vmatpush.bf16.msrb.mxu1 %v643_v51 }
 0x2a2   :  { %662 = vmatpush.bf16.msrb.mxu1 %v642_v54 }
 0x2a6   :  { %663 = vmatpush.bf16.msrb.mxu1 %v641_v57 }
 0x2a9   :  { %814 = vmatmul.msk.bf16.vlgmr.msrb.gmra.mxu1 %vm652_vm1, %v645_v58 }
 0x326   :  { %v665_v60 = vpop.f32.mrf.mxu1 }
 0x327   :  { %v666_v63 = vadd.f32 %v665_v60, %v650_v59 }
 0x329   :  { %v670_v0 = vsel %vm669_vm2, %v666_v63, -inf }
 0x32a   :  { %v671_v1 = vrot.slane %v670_v0, 4 }
 0x32c   :  { %v672_v2 = vmax.f32 %v670_v0, %v671_v1 }
 0x32e   :  { %v673_v3 = vrot.slane %v672_v2, 2  ;;  %v667_v4 = vpop.f32.mrf.mxu1 }
 0x330   :  { %v674_v6 = vmax.f32 %v672_v2, %v673_v3 }
 0x332   :  { %v675_v7 = vrot.slane %v674_v6, 1 }
 0x334   :  { %v676_v8 = vmax.f32 %v674_v6, %v675_v7 }
 0x336   :  { %v677_v9 = vsub.f32 %v666_v63, %v676_v8 }
 0x338   :  { %v678_v10 = vmul.f32 1.442695, %v677_v9 }
 0x33a   :  { %849 = vpow2.f32 %v678_v10 }
 0x340   :  { %v850_v11 = vpop.eup %849 }
 0x341   :  { %v680_v12 = vsel %vm669_vm2, %v850_v11, 0.0 }
 0x342   :  { %v681_v47 = vrot.slane %v680_v12, 4 }
 0x344   :  { %v682_v13 = vadd.f32 %v681_v47, %v680_v12 }
 0x346   :  { %v683_v14 = vrot.slane %v682_v13, 2 }
 0x348   :  { %v684_v15 = vadd.f32 %v683_v14, %v682_v13 }
 0x34a   :  { %v685_v17 = vrot.slane %v684_v15, 1 }
 0x34c   :  { %v686_v18 = vadd.f32 %v685_v17, %v684_v15 }
 0x34e   :  { %851 = vrcp.f32 %v686_v18 }
 0x354   :  { %v852_v16 = vpop.eup %851 }
 0x355   :  { %v688_v19 = vmul.f32 %v852_v16, %v850_v11 }
 0x357   :  { %689 = vst [vmem:[%s1175_s9] sm:$0xf] %v688_v19 }

</bundles_post_ra>
